<compile_context>
chip_gen: v6e
topology: v6e:2x2x1
jax: 0.10.0
libtpu: 0.0.40
codegen_flags: <defaults>
</compile_context>

<pallas_src>
import functools
import math

import jax
import jax.numpy as jnp
from jax import lax
from jax.experimental import pallas as pl
from jax.experimental.pallas import tpu as pltpu

_CLAMP_MIN = 0.0001
_CLAMP_MAX = 1.0 - 0.0001
_POS_W = 5.0

_LANES = 128
_SUBLANES = 8
_CHUNK_ROWS = 512              # in-kernel strip-mine granularity (256 KiB f32/operand)
_TARGET_TILE_BYTES = 2 << 20   # ~2 MiB DMA tile per input (safe on v5e/v6e/v7x)
_MIN_GRID = 8                  # prefer >= 8 grid steps (v7x megacore sharding)


def _elementwise_loss(logits_f32, targets_f32):
    """loss = w * (clip(sigmoid(x)) - t)^2 with w = 5 if t==1, 1 if t==0, else 0.

    Algebraically identical to the reference pos/neg-mask formulation for all
    t (both reduce to 0 for t not in {0,1}), with ~half the VALU ops and
    tile-sized intermediates. Sigmoid goes to the EUP slot.
    """
    p = jnp.clip(jax.nn.sigmoid(logits_f32), _CLAMP_MIN, _CLAMP_MAX)
    w = jnp.where(targets_f32 == 1.0, _POS_W,
                  (targets_f32 == 0.0).astype(jnp.float32))
    d = p - targets_f32
    return w * d * d


def _mse_partial_sum_kernel(logits_ref, targets_ref, partial_ref, *,
                            rows_per_tile, chunk_rows, rows_total, mask_rows):
    """Per-tile (8,128) partial sum of the loss (reduction='mean' path)."""
    n_chunks = rows_per_tile // chunk_rows
    tile_row0 = pl.program_id(0) * rows_per_tile

    def chunk_body(c, acc):
        r0 = pl.multiple_of(c * chunk_rows, _SUBLANES)
        x = logits_ref[pl.ds(r0, chunk_rows), :].astype(jnp.float32)
        t = targets_ref[pl.ds(r0, chunk_rows), :].astype(jnp.float32)
        loss = _elementwise_loss(x, t)
        if mask_rows:
            # Zero rows past the true extent (only the ragged last grid step);
            # ragged lanes inside the last valid row carry target=-1 -> w=0.
            row = tile_row0 + r0 + lax.broadcasted_iota(jnp.int32, loss.shape, 0)
            loss = jnp.where(row < rows_total, loss, 0.0)
        # (chunk,128) -> (chunk/8, 8, 128); leading-axis sum is pure vreg adds
        # (VPU), keeping the cross-lane XLU reduce out of the hot loop.
        return acc + jnp.sum(loss.reshape(-1, _SUBLANES, _LANES), axis=0)

    acc0 = jnp.zeros((_SUBLANES, _LANES), jnp.float32)
    partial_ref[0, :, :] = lax.fori_loop(0, n_chunks, chunk_body, acc0)


def _mse_none_kernel(logits_ref, targets_ref, out_ref, *, rows_per_tile, chunk_rows):
    """Elementwise loss (reduction='none' path), strip-mined over the tile."""
    n_chunks = rows_per_tile // chunk_rows

    @pl.loop(0, n_chunks)
    def _(c):
        r0 = pl.multiple_of(c * chunk_rows, _SUBLANES)
        x = logits_ref[pl.ds(r0, chunk_rows), :].astype(jnp.float32)
        t = targets_ref[pl.ds(r0, chunk_rows), :].astype(jnp.float32)
        out_ref[pl.ds(r0, chunk_rows), :] = _elementwise_loss(x, t)


def _round_up(x, m):
    return ((x + m - 1) // m) * m


def _choose_tiling(rows_total, sub, max_itemsize):
    """Pick (grid, rows_per_tile, chunk_rows) for a (rows_total, 128) slab."""
    target_rows = max(sub, (_TARGET_TILE_BYTES // (_LANES * max_itemsize)) // sub * sub)
    desired_grid = max(1, min(_MIN_GRID, rows_total // sub))
    rows_per_tile = min(target_rows, _round_up(pl.cdiv(rows_total, desired_grid), sub))
    if rows_per_tile > _CHUNK_ROWS:
        rows_per_tile = _round_up(rows_per_tile, _CHUNK_ROWS)  # whole # of chunks
    chunk_rows = min(rows_per_tile, _CHUNK_ROWS)
    grid = pl.cdiv(rows_total, rows_per_tile)
    return grid, rows_per_tile, chunk_rows


def mse_loss(logits, targets, reduction="mean", *, min_pallas_elems=64 * 1024):
    """Pallas implementation of the PyTorch MSELoss module's forward."""
    assert logits.shape == targets.shape
    orig_shape = logits.shape
    batch_size = orig_shape[0]
    n_elems = math.prod(orig_shape)

    itemsizes = (jnp.dtype(logits.dtype).itemsize, jnp.dtype(targets.dtype).itemsize)
    sub = max(_SUBLANES, *(32 // s for s in itemsizes))  # 8 f32 / 16 bf16 / 32 int8
    rows_total = pl.cdiv(n_elems, _LANES)

    # Sub-tile workloads: the fixed pallas_call/layout cost dominates, so a
    # fused XLA elementwise(+reduce) is strictly faster -- short-circuit.
    if n_elems < max(min_pallas_elems, 2 * sub * _LANES):
        loss = _elementwise_loss(logits.astype(jnp.float32),
                                 targets.astype(jnp.float32))
        if reduction == "mean":
            return jnp.sum(loss) / jnp.float32(batch_size)
        return loss

    grid, rows_per_tile, chunk_rows = _choose_tiling(rows_total, sub, max(itemsizes))

    padded = rows_total * _LANES != n_elems
    if padded:
        pad = rows_total * _LANES - n_elems
        # Targets padded with -1.0 (neither 0 nor 1) -> weight 0 on the tail.
        l2d = jnp.pad(logits.reshape(-1), (0, pad)).reshape(rows_total, _LANES)
        t2d = jnp.pad(targets.reshape(-1), (0, pad),
                      constant_values=-1.0).reshape(rows_total, _LANES)
    else:
        l2d = logits.reshape(rows_total, _LANES)   # free layout view
        t2d = targets.reshape(rows_total, _LANES)

    in_specs = [
        pl.BlockSpec((rows_per_tile, _LANES), lambda i: (i, 0)),
        pl.BlockSpec((rows_per_tile, _LANES), lambda i: (i, 0)),
    ]
    params = pltpu.CompilerParams(
        dimension_semantics=("parallel",),
        # Let XLA fuse the (tail-only) pad/reshape producers into the operands
        # instead of materializing a padded HBM copy of both inputs.
        allow_input_fusion=[True, True] if padded else None,
    )
    in_bytes = n_elems * sum(itemsizes)

    if reduction == "mean":
        kernel = functools.partial(
            _mse_partial_sum_kernel,
            rows_per_tile=rows_per_tile, chunk_rows=chunk_rows,
            rows_total=rows_total,
            mask_rows=(rows_total % rows_per_tile != 0))
        partials = pl.pallas_call(
            kernel,
            out_shape=jax.ShapeDtypeStruct((grid, _SUBLANES, _LANES), jnp.float32),
            grid=(grid,),
            in_specs=in_specs,
            out_specs=pl.BlockSpec((1, _SUBLANES, _LANES), lambda i: (i, 0, 0)),
            compiler_params=params,
            cost_estimate=pl.CostEstimate(
                flops=8 * n_elems,
                transcendentals=n_elems,
                bytes_accessed=in_bytes + grid * _SUBLANES * _LANES * 4),
        )(l2d, t2d)
        # Tiny (grid, 8, 128) final reduction + batch-size divide in XLA.
        return jnp.sum(partials) / jnp.float32(batch_size)

    # reduction == 'none' (or anything else, mirroring the torch module).
    kernel = functools.partial(
        _mse_none_kernel, rows_per_tile=rows_per_tile, chunk_rows=chunk_rows)
    out = pl.pallas_call(
        kernel,
        out_shape=jax.ShapeDtypeStruct((rows_total, _LANES), jnp.float32),
        grid=(grid,),
        in_specs=in_specs,
        out_specs=pl.BlockSpec((rows_per_tile, _LANES), lambda i: (i, 0)),
        compiler_params=params,
        cost_estimate=pl.CostEstimate(
            flops=8 * n_elems,
            transcendentals=n_elems,
            bytes_accessed=in_bytes + rows_total * _LANES * 4),
    )(l2d, t2d)
    if padded:
        return out.reshape(-1)[:n_elems].reshape(orig_shape)
    return out.reshape(orig_shape)


def _reference(logits, targets, reduction="mean"):
    """Literal JAX transcription of the torch module (independent check)."""
    inputs = jnp.clip(jax.nn.sigmoid(logits.astype(jnp.float32)),
                      _CLAMP_MIN, _CLAMP_MAX)
    t = targets.astype(jnp.float32)
    pos_id = (t == 1.0).astype(jnp.float32)
    neg_id = (t == 0.0).astype(jnp.float32)
    loss = 5.0 * pos_id * (inputs - t) ** 2 + 1.0 * neg_id * inputs ** 2
    if reduction == "mean":
        return jnp.sum(loss) / logits.shape[0]
    return loss


if __name__ == "__main__":
    key = jax.random.PRNGKey(0)
    k1, k2, k3, k4 = jax.random.split(key, 4)

    # Small NCHW inputs (batch=2, channels=4, spatial=16x16), forced through
    # the Pallas kernels to exercise them.
    logits = jax.random.normal(k1, (2, 4, 16, 16), dtype=jnp.float32)
    targets = (jax.random.uniform(k2, (2, 4, 16, 16)) > 0.5).astype(jnp.float32)

    out = jax.block_until_ready(mse_loss(logits, targets, "mean", min_pallas_elems=0))
    ref = _reference(logits, targets, "mean")
    assert jnp.allclose(out, ref, rtol=1e-5, atol=1e-4), (out, ref)

    out_none = jax.block_until_ready(mse_loss(logits, targets, "none", min_pallas_elems=0))
    ref_none = _reference(logits, targets, "none")
    assert jnp.allclose(out_none, ref_none, rtol=1e-5, atol=1e-5)

    # Non-128-aligned C*H*W: fused ragged-tail pad, partial last grid block,
    # and in-kernel row masking.
    l_odd = jax.random.normal(k3, (2, 3, 37, 41), dtype=jnp.float32)
    t_odd = (jax.random.uniform(k4, (2, 3, 37, 41)) > 0.5).astype(jnp.float32)
    out_odd = jax.block_until_ready(mse_loss(l_odd, t_odd, "mean", min_pallas_elems=0))
    ref_odd = _reference(l_odd, t_odd, "mean")
    assert jnp.allclose(out_odd, ref_odd, rtol=1e-5, atol=1e-4), (out_odd, ref_odd)
    out_odd_none = jax.block_until_ready(mse_loss(l_odd, t_odd, "none", min_pallas_elems=0))
    assert jnp.allclose(out_odd_none, _reference(l_odd, t_odd, "none"),
                        rtol=1e-5, atol=1e-5)

    # Default path: tiny inputs short-circuit to fused XLA.
    out_small = jax.block_until_ready(mse_loss(logits, targets, "mean"))
    assert jnp.allclose(out_small, ref, rtol=1e-5, atol=1e-4)

    # Larger aligned shape through the default Pallas path (multi-tile grid,
    # no padding, no output slice).
    l_big = jax.random.normal(k1, (4, 8, 64, 72), dtype=jnp.float32)
    t_big = (jax.random.uniform(k2, (4, 8, 64, 72)) > 0.5).astype(jnp.float32)
    out_big = jax.block_until_ready(mse_loss(l_big, t_big, "mean"))
    ref_big = _reference(l_big, t_big, "mean")
    assert jnp.allclose(out_big, ref_big, rtol=1e-4, atol=1e-2), (out_big, ref_big)

    print("KERNEL_OK")
</pallas_src>

<mosaic_0001>
module attributes {stable_mosaic.version = 11 : i64} {
  func.func @_mse_partial_sum_kernel(%arg0: i32, %arg1: memref<8x128xf32, #tpu.memory_space<vmem>>, %arg2: memref<8x128xf32, #tpu.memory_space<vmem>>, %arg3: memref<1x8x128xf32, #tpu.memory_space<vmem>>) attributes {dimension_semantics = [#tpu.dimension_semantics<parallel>], iteration_bounds = array<i64: 2>, scalar_prefetch = 0 : i64, scratch_operands = 0 : i64, tpu.core_type = #tpu.core_type<tc>, window_params = [{transform_indices = @transform_0, window_bounds = array<i64: 8, 128>}, {transform_indices = @transform_1, window_bounds = array<i64: 8, 128>}, {transform_indices = @transform_2, window_bounds = array<i64: 1, 8, 128>}]} {
    %cst = arith.constant 0.000000e+00 : f32
    %0 = vector.broadcast %cst : f32 to vector<8x128xf32>
    %c0_i32 = arith.constant 0 : i32
    %c8_i32 = arith.constant 8 : i32
    %1 = arith.muli %c0_i32, %c8_i32 : i32
    %2 = tpu.assume_multiple %1, 8 : i32
    %3 = arith.index_cast %2 : i32 to index
    %c0 = arith.constant 0 : index
    %4 = vector.load %arg1[%3, %c0] : memref<8x128xf32, #tpu.memory_space<vmem>>, vector<8x128xf32>
    %5 = arith.index_cast %2 : i32 to index
    %c0_0 = arith.constant 0 : index
    %6 = vector.load %arg2[%5, %c0_0] : memref<8x128xf32, #tpu.memory_space<vmem>>, vector<8x128xf32>
    %7 = arith.negf %4 : vector<8x128xf32>
    %8 = math.exp %7 : vector<8x128xf32>
    %cst_1 = arith.constant 1.000000e+00 : f32
    %9 = vector.broadcast %cst_1 : f32 to vector<8x128xf32>
    %10 = arith.addf %9, %8 : vector<8x128xf32>
    %11 = arith.divf %9, %10 : vector<8x128xf32>
    %cst_2 = arith.constant 9.99999974E-5 : f32
    %cst_3 = arith.constant 0.999899983 : f32
    %12 = vector.broadcast %cst_2 : f32 to vector<8x128xf32>
    %13 = arith.maximumf %12, %11 : vector<8x128xf32>
    %14 = vector.broadcast %cst_3 : f32 to vector<8x128xf32>
    %15 = arith.minimumf %14, %13 : vector<8x128xf32>
    %cst_4 = arith.constant 1.000000e+00 : f32
    %16 = vector.broadcast %cst_4 : f32 to vector<8x128xf32>
    %17 = arith.cmpf oeq, %6, %16 : vector<8x128xf32>
    %cst_5 = arith.constant 0.000000e+00 : f32
    %18 = vector.broadcast %cst_5 : f32 to vector<8x128xf32>
    %19 = arith.cmpf oeq, %6, %18 : vector<8x128xf32>
    %20 = arith.extui %19 : vector<8x128xi1> to vector<8x128xi32>
    %21 = arith.sitofp %20 : vector<8x128xi32> to vector<8x128xf32>
    %cst_6 = arith.constant 5.000000e+00 : f32
    %22 = vector.broadcast %cst_6 : f32 to vector<8x128xf32>
    %23 = arith.select %17, %22, %21 : vector<8x128xi1>, vector<8x128xf32>
    %24 = arith.subf %15, %6 : vector<8x128xf32>
    %25 = arith.mulf %23, %24 : vector<8x128xf32>
    %26 = arith.mulf %25, %24 : vector<8x128xf32>
    %27 = vector.shape_cast %26 : vector<8x128xf32> to vector<1x8x128xf32>
    %cst_7 = arith.constant dense<0.000000e+00> : vector<8x128xf32>
    %28 = vector.multi_reduction <add>, %27, %cst_7 [0] : vector<1x8x128xf32> to vector<8x128xf32>
    %29 = arith.addf %0, %28 : vector<8x128xf32>
    %c1_i32 = arith.constant 1 : i32
    %c0_8 = arith.constant 0 : index
    %c0_9 = arith.constant 0 : index
    %c0_10 = arith.constant 0 : index
    %30 = vector.load %arg3[%c0_8, %c0_9, %c0_10] : memref<1x8x128xf32, #tpu.memory_space<vmem>>, vector<1x8x128xf32>
    %31 = vector.shape_cast %30 : vector<1x8x128xf32> to vector<8x128xf32>
    %32 = vector.shape_cast %29 : vector<8x128xf32> to vector<1x8x128xf32>
    tpu.vector_store %arg3[%c0_8, %c0_9, %c0_10], %32 {strides = array<i32>} : memref<1x8x128xf32, #tpu.memory_space<vmem>>, vector<1x8x128xf32>,
    return
  }
  func.func @transform_0(%arg0: i32) -> (i32, i32) {
    %c0_i32 = arith.constant 0 : i32
    %c0_i32_0 = arith.constant 0 : i32
    return %arg0, %c0_i32 : i32, i32
  }
  func.func @transform_1(%arg0: i32) -> (i32, i32) {
    %c0_i32 = arith.constant 0 : i32
    %c0_i32_0 = arith.constant 0 : i32
    return %arg0, %c0_i32 : i32, i32
  }
  func.func @transform_2(%arg0: i32) -> (i32, i32, i32) {
    %c0_i32 = arith.constant 0 : i32
    %c0_i32_0 = arith.constant 0 : i32
    %c0_i32_1 = arith.constant 0 : i32
    return %arg0, %c0_i32, %c0_i32_0 : i32, i32, i32
  }
}

</mosaic_0001>

<bundles_post_ra>
// kernel: tpu_custom_call.1
= control target key start
LH: loop header
LB: loop body
LE: loop exit
PB: predicated region body
PF: predicated region fallthrough
CT: control target
= control target key end

     0   :  { %7 = vsyncpa [#allocation3], 0  ;;  %s741_s0 = inlined_call_operand.hbm [shape: f32[16,128], index: 0, kind: input, shape index: {}]   ;;  %s742_s1 = inlined_call_operand.hbm [shape: f32[16,128], index: 1, kind: input, shape index: {}]   ;;  %s743_s2 = inlined_call_operand.hbm [shape: f32[2,8,128], index: 2, kind: output, shape index: {}]  }
   0x1   :  { %9 = vsyncpa [#allocation3 + $0x1], 0 }
   0x2   :  { %10 = vsyncpa [#allocation6], 0 }
   0x3   :  { %12 = vsyncpa [#allocation6 + $0x1], 0 }
   0x4   :  { %13 = vsyncpa [#allocation4], 0 }
   0x5   :  { %15 = vsyncpa [#allocation4 + $0x1], 0  ;;  %s542_s9 = smov 0   ;;  %s544_s10 = smov 0  }
   0x6   :  { %s546_s11 = smov 0   ;;  %s548_s12 = smov 0  }
   0x7 LB: > { %s563_s13 = sadd.s32 4294967295, %s521_s12   ;;  %s324_s14 = sadd.s32 4294967294, %s521_s12   ;;  %s521_s12 = sphi %s548_s12, %s762_s12   ;;  %s517_s11 = sphi %s546_s11, %s761_s11   ;;  %s513_s10 = sphi %s544_s10, %s760_s10   ;;  %s509_s9 = sphi %s542_s9, %s759_s9  }
   0x8   : > { %s567_s15 = sadd.s32 1, %s521_s12   ;;  %s28_s16 = sadd.s32 1, %s517_s11 }
   0x9   : > { %s25_s17 = ssub.s32 %s521_s12, %s567_s15  ;;  %p35_p0 = scmp.ne.s32.totalorder %s517_s11, %s513_s10 }
   0xa   : > { %p26_p1 = scmp.eq.s32.totalorder %s25_s17, 0  ;;  %p36_p2 = scmp.eq.s32.totalorder %s521_s12, 0 }
   0xb   : > { %p41_p3 = scmp.ne.s32.totalorder %s513_s10, %s509_s9  ;;  %p42_p4 = scmp.eq.s32.totalorder %s563_s13, 0 }
   0xc   : > { %s579_s18 = scalar_select %p26_p1, %s517_s11, %s28_s16  }
   0xd   : > { %p581_p5 = por %p36_p2, %p35_p0  ;;  %p585_p6 = por %p42_p4, %p41_p3 }
   0xe   : > { %p91_p7 = scmp.eq.s32.totalorder %s563_s13, 1  ;;  %p97_p8 = scmp.eq.s32.totalorder %s324_s14, 1 }
   0xf   : > { %s747_s20 = scalar_select %p585_p6, 1, 0 }
  0x10   : > { %p358_p10 = scmp.lt.s32.totalorder %s521_s12, 2  ;;  %p592_p11 = por %p91_p7, %p35_p0 }
  0x11   : > { %p596_p12 = por %p97_p8, %p41_p3  ;;  %s601_s23 = sand.u32 1, %s517_s11  }
  0x12   : > { %s748_s21 = scalar_select %p592_p11, 1, 0 }
  0x13   : > { %s749_s22 = scalar_select %p596_p12, 1, 0 }
  0x14   : > { %s328_s24 = sshll.u32 %s521_s12, 7  ;;  %s327_s25 = sshll.u32 %s601_s23, 3 }
  0x15   : > { %s610_s28 = scalar_lea.hbm %s741_s0, %s328_s24  ;;  %s121_s29 = scalar_lea.vmem [#allocation2], %s327_s25 }
  0x16   : > { %s128_s30 = sshll.u32 %s121_s29, 4  ;;  %p616_p13 = pnand %p358_p10, %p581_p5  ;;  %s620_s30 = int_to_ptr.vmem [resolvable:$true] %s128_s30 }
  0x17   : > { %s118_s4 = scalar_lea.sflag [#allocation3], %s601_s23  ;;  %s397_s5 = scalar_lea.hbm %s610_s28, 128 }
  0x18   : > { %p398_p2 = scmp.ne.s32.totalorder %s610_s28, %s397_s5  ;;  %p399_p3 = pneg %p616_p13 }
  0x19   : > { %s402_s8 = scalar_lea.hbm %s741_s0, 256  ;;  %p403_p5 = scmp.lt.s32.totalorder %s610_s28, %s741_s0 }
  0x1a   : > { %p400_p4 = pnand %p399_p3, %p398_p2  ;;  %p404_p8 = scmp.lt.s32.totalorder %s402_s8, %s397_s5 }
  0x1c   : > { %p401_p7 = pneg %p400_p4  ;;  %p405_p10 = por %p404_p8, %p403_p5 }
  0x1e   : > { %p406_p9 = pnand %p405_p10, %p401_p7 }
  0x20   : > { %409 = shalt.err (!%p406_p9)
}
  0x21   : > { %s410_s17 = scalar_lea.vmem %s620_s30, 128  ;;  %s523_s19 = smov [#allocation2]  }
  0x22   : > { %p411_p0 = scmp.ne.s32.totalorder %s620_s30, %s410_s17  ;;  %s415_s26 = sshll.u32 %s523_s19, 4  ;;  %s416_s26 = int_to_ptr.vmem [resolvable:$false] %s415_s26 }
  0x23   : > { %s417_s27 = scalar_lea.vmem %s416_s26, 256  ;;  %p418_p1 = scmp.lt.s32.totalorder %s620_s30, %s416_s26 }
  0x24   : > { %p413_p2 = pnand %p411_p0, %p399_p3  ;;  %p419_p12 = scmp.lt.s32.totalorder %s417_s27, %s410_s17 }
  0x26   : > { %p414_p4 = pneg %p413_p2  ;;  %p420_p11 = por %p419_p12, %p418_p1 }
  0x28   : > { %p421_p5 = pnand %p420_p11, %p414_p4 }
  0x2a   : > { %424 = shalt.err (!%p421_p5)
}
  0x2b   : > { %350 = dma.hbm_to_vmem [thread:$0]  (!%p616_p13), %s610_s28, 128, %s620_s30, %s118_s4  }
  0x2c   : > { %p751_p9 = scmp.lt.s32.totalorder %s521_s12, 3  ;;  %p752_p0 = scmp.ge.s32.totalorder %s521_s12, 1 }
  0x2d   : > { %s662_s7 = scalar_lea.hbm %s742_s1, %s328_s24  ;;  %s139_s8 = scalar_lea.vmem [#allocation5], %s327_s25 }
  0x2e   : > { %p653_p7 = pnand %p752_p0, %p751_p9  ;;  %s146_s14 = sshll.u32 %s139_s8, 4  ;;  %s147_s14 = int_to_ptr.vmem [resolvable:$true] %s146_s14 }
  0x2f   : > { %s136_s28 = scalar_lea.sflag [#allocation6], %s601_s23  ;;  %s425_s30 = scalar_lea.hbm %s662_s7, 128 }
  0x30   : > { %s753_s29 = scalar_select %p653_p7, 1, 0 }
  0x31   : > { %p426_p11 = scmp.ne.s32.totalorder %s662_s7, %s425_s30  ;;  %s430_s17 = scalar_lea.hbm %s742_s1, 256 }
  0x32   : > { %p431_p8 = scmp.lt.s32.totalorder %s662_s7, %s742_s1  ;;  %p432_p10 = scmp.lt.s32.totalorder %s430_s17, %s425_s30 }
  0x33   : > { %p428_p12 = pnand %p426_p11, %p399_p3 }
  0x34   : > { %p433_p2 = por %p432_p10, %p431_p8 }
  0x35   : > { %p429_p1 = pneg %p428_p12 }
  0x37   : > { %p434_p4 = pnand %p433_p2, %p429_p1 }
  0x39   : > { %437 = shalt.err (!%p434_p4)
}
  0x3a   : > { %s438_s25 = scalar_lea.vmem %s147_s14, 128  ;;  %s524_s23 = smov [#allocation5]  }
  0x3b   : > { %p439_p5 = scmp.ne.s32.totalorder %s147_s14, %s438_s25  ;;  %s443_s26 = sshll.u32 %s524_s23, 4  ;;  %s444_s26 = int_to_ptr.vmem [resolvable:$false] %s443_s26 }
  0x3c   : > { %s445_s27 = scalar_lea.vmem %s444_s26, 256  ;;  %p446_p11 = scmp.lt.s32.totalorder %s147_s14, %s444_s26 }
  0x3d   : > { %p441_p9 = pnand %p439_p5, %p399_p3  ;;  %p447_p12 = scmp.lt.s32.totalorder %s445_s27, %s438_s25 }
  0x3f   : > { %p442_p0 = pneg %p441_p9  ;;  %p448_p6 = por %p447_p12, %p446_p11 }
  0x41   : > { %p449_p7 = pnand %p448_p6, %p442_p0 }
  0x43   : > { %452 = shalt.err (!%p449_p7)
}
  0x44   : > { %353 = dma.hbm_to_vmem [thread:$0]  (!%p616_p13), %s662_s7, 128, %s147_s14, %s136_s28  }
  0x45   : > { %p754_p1 = scmp.ne.s32.totalorder %s753_s29, 0 }
  0x46   : > { %s688_s5 = sand.u32 (!%p754_p1), 1, %s513_s10   ;;  %p755_p6 = scmp.ne.s32.totalorder (!%p754_p1), %s747_s20, 0 }
  0x47   : > { %155 = sbr.rel (%p754_p1) target bundleno = 135 (0x87), region = 28  ;;  %s691_s6 = sshll.u32 (!%p754_p1), %s688_s5, 3 }
  0x48   : > { %s158_s8 = scalar_lea.sflag (!%p754_p1), [#allocation3], %s688_s5  ;;  %s161_s30 = scalar_lea.vmem (!%p754_p1), [#allocation2], %s691_s6 }
  0x4c   : > { %496 = dma.done.wait (%p755_p6), %s158_s8, 128  }
  0x4d   : > { %498 = vsyncadd (%p755_p6), %s158_s8, 4294967168  ;;  %s167_s3 = scalar_lea.sflag [#allocation6], %s688_s5  ;;  %s170_s29 = scalar_lea.vmem [#allocation5], %s691_s6 }
  0x4e   : > { %500 = dma.done.wait (%p755_p6), %s167_s3, 128  }
  0x4f   : > { %502 = vsyncadd (%p755_p6), %s167_s3, 4294967168  ;;  %v196_v0 = vld [vmem:[%s161_s30] sm:$0xff]  ;;  %v197_v4 = vld [vmem:[%s170_s29] sm:$0xff]  ;;  %v525_v7 = vmov 0.0   ;;  %s195_s20 = scalar_lea.vmem [#allocation7], %s691_s6  ;;  %s338_s14 = sshll.u32 %s563_s13, 7 }
  0x50   : > { %v335_v1 = vmul.f32 -1.442695, %v196_v0  ;;  %vm207_vm0 = vcmp.eq.f32.partialorder %v197_v4, 0.0  ;;  %vm206_vm1 = vcmp.eq.f32.partialorder %v197_v4, 1.0  ;;  %s231_s7 = sshll.u32 %s195_s20, 4  ;;  %s229_s16 = scalar_lea.hbm %s743_s2, %s338_s14  ;;  %s232_s7 = int_to_ptr.vmem [resolvable:$true] %s231_s7 }
  0x51   : > { %v336_v8 = vsel %vm207_vm0, 1.0, %v525_v7  ;;  %s218_s17 = scalar_lea.sflag [#allocation4], %s688_s5  ;;  %s453_s24 = scalar_lea.vmem %s232_s7, 128 }
  0x52   : > { %393 = vpow2.f32 %v335_v1  ;;  %v210_v10 = vsel %vm206_vm1, 5.0, %v336_v8  ;;  %p454_p13 = scmp.ne.s32.totalorder %s232_s7, %s453_s24  ;;  %p756_p3 = scmp.ne.s32.totalorder %s748_s21, 0 }
  0x53   : > { %s526_s19 = smov [#allocation7]  }
  0x54   : > { %p455_p7 = pnand %p454_p13, %p756_p3  ;;  %s457_s25 = sshll.u32 %s526_s19, 4  ;;  %s458_s25 = int_to_ptr.vmem [resolvable:$false] %s457_s25 }
  0x55   : > { %s459_s23 = scalar_lea.vmem %s458_s25, 256  ;;  %p460_p10 = scmp.lt.s32.totalorder %s232_s7, %s458_s25 }
  0x56   : > { %p456_p8 = pneg %p455_p7  ;;  %p461_p2 = scmp.lt.s32.totalorder %s459_s23, %s453_s24 }
  0x58   : > { %p462_p4 = por %p461_p2, %p460_p10 }
  0x5a   : > { %p463_p5 = pnand %p462_p4, %p456_p8 }
  0x5f   : > { %v394_v2 = vpop.eup %393 }
  0x60   : > { %v201_v3 = vadd.f32 1.0, %v394_v2 }
  0x62   : > { %395 = vrcp.f32 %v201_v3 }
  0x6f   : > { %v396_v5 = vpop.eup %395 }
  0x70   : > { %v204_v6 = vmax.f32 %v396_v5, 0.0001 }
  0x72   : > { %v205_v9 = vmin.f32 %v204_v6, 0.9999 }
  0x74   : > { %v211_v11 = vsub.f32 %v205_v9, %v197_v4 }
  0x76   : > { %v212_v12 = vmul.f32 %v211_v11, %v210_v10 }
  0x78   : > { %v213_v13 = vmul.f32 %v212_v12, %v211_v11 }
  0x7a   : > { %216 = vst [vmem:[%s195_s20] sm:$0xff] %v213_v13 }
  0x7b   : > { %466 = shalt.err (!%p463_p5)
}
  0x7c   : > { %s467_s13 = scalar_lea.hbm %s229_s16, 128  ;;  %s471_s5 = scalar_lea.hbm %s743_s2, 256 }
  0x7d   : > { %p468_p9 = scmp.ne.s32.totalorder %s229_s16, %s467_s13  ;;  %p472_p12 = scmp.lt.s32.totalorder %s229_s16, %s743_s2 }
  0x7e   : > { %p473_p1 = scmp.lt.s32.totalorder %s471_s5, %s467_s13 }
  0x7f   : > { %p469_p0 = pnand %p468_p9, %p756_p3 }
  0x80   : > { %p474_p6 = por %p473_p1, %p472_p12 }
  0x81   : > { %p470_p11 = pneg %p469_p0 }
  0x83   : > { %p475_p13 = pnand %p474_p6, %p470_p11 }
  0x85   : > { %478 = shalt.err (!%p475_p13)
}
  0x86   : > { %345 = dma.vmem_to_hbm [thread:$0]  (%p756_p3), %s232_s7, 128, %s229_s16, %s218_s17  }
  0x87 PF: > { %s243_s30 = sand.u32 1, %s509_s9   ;;  %p757_p7 = scmp.ne.s32.totalorder %s749_s22, 0 }
  0x88   : > { %p758_p8 = scmp.ge.s32.totalorder %s521_s12, 2  ;;  %s244_s3 = scalar_lea.sflag [#allocation4], %s243_s30 }
  0x8a   : > { %p355_p10 = pnand %p758_p8, %p757_p7 }
  0x8c   : > { %p356_p2 = pneg %p355_p10 }
  0x8e   : > { %504 = dma.done.wait (%p356_p2), %s244_s3, 128  }
  0x8f   : > { %506 = vsyncadd (%p356_p2), %s244_s3, 4294967168  ;;  %p18_p4 = scmp.ge.s32.totalorder %s567_s15, 4   ;;  %s759_s9 = smov %s513_s10 }
  0x90   : > { %s760_s10 = smov %s517_s11  ;;  %s761_s11 = smov %s579_s18 }
  0x91   : > { %s762_s12 = smov %s567_s15  ;;  %20 = sbr.rel (!%p18_p4) target bundleno = 7 (0x7), region = 86 }
  0x96   :  { %249 = vsyncpa [#allocation3], 1 }
  0x97   :  { %251 = vsyncpa [#allocation3 + $0x1], 1 }
  0x98   :  { %252 = vsyncpa [#allocation6], 1 }
  0x99   :  { %254 = vsyncpa [#allocation6 + $0x1], 1 }
  0x9a   :  { %255 = vsyncpa [#allocation4], 1 }
  0x9b   :  { %257 = vsyncpa [#allocation4 + $0x1], 1 }

</bundles_post_ra>
